<compile_context>
chip_gen: v5e
topology: v5e:2x2
jax: 0.10.0
libtpu: 0.0.40
codegen_flags: <defaults>
</compile_context>

<pallas_src>
import functools

import jax
import jax.numpy as jnp
from jax.experimental import pallas as pl
from jax.experimental.pallas import tpu as pltpu


def _ls_ce_kernel(pred_ref, tgt_ref, out_ref, m_sc, l_sc, acc_sc,
                  *, smoothing, n_rows, n_classes, col_mask_needed):
    """One (row-tile, class-tile) grid step of label-smoothing cross entropy."""
    tn, tc = pred_ref.shape
    ri = pl.program_id(0)                       # row-tile index   ("parallel")
    ci = pl.program_id(1)                       # class-tile index ("arbitrary")
    last_ci = pl.num_programs(1) - 1

    @pl.when(ci == 0)
    def _():                                    # init running stats per row tile
        m_sc[...] = jnp.full(m_sc.shape, -jnp.inf, jnp.float32)
        l_sc[...] = jnp.zeros(l_sc.shape, jnp.float32)
        acc_sc[...] = jnp.zeros(acc_sc.shape, jnp.float32)

    confidence = 1.0 - smoothing
    eps_over_c = smoothing / n_classes

    # Single f32 view of the streamed tile (no-op cast for f32 inputs; bf16
    # stays bf16 in HBM and is widened only here).
    pf = pred_ref[...].astype(jnp.float32)

    # Grid-invariant local column iota; all per-step offsets folded into
    # scalars instead of full-tile int math.
    col = jax.lax.broadcasted_iota(jnp.int32, (tn, tc), 1)
    tgt_local = tgt_ref[...] - ci * tc                      # (TN, 1) i32

    # Target gather.  Padded tail columns can never match (targets < C), and
    # garbage targets of padded rows only poison their own (masked) row, so
    # this needs no tail masking.  Exactly one hit per valid row.
    # (Out-of-range targets >= C are silently dropped, like any gather.)
    t_hit = jnp.sum(jnp.where(col == tgt_local, pf, 0.0),
                    axis=-1, keepdims=True)                 # (TN, 1) f32

    def update(pf_max, pf_sum):
        # Online logsumexp + fused loss accumulator (all (TN, 1) f32 scratch).
        m_old = m_sc[...]
        m_new = jnp.maximum(m_old, jnp.max(pf_max, axis=-1, keepdims=True))
        l_sc[...] = (l_sc[...] * jnp.exp(m_old - m_new)
                     + jnp.sum(jnp.exp(pf_max - m_new), axis=-1, keepdims=True))
        m_sc[...] = m_new
        acc_sc[...] += (confidence * t_hit
                        + eps_over_c * jnp.sum(pf_sum, axis=-1, keepdims=True))

    if col_mask_needed:
        # Only the last class tile can be partial -> mask only there.
        @pl.when(ci == last_ci)
        def _():
            valid = col < (n_classes - ci * tc)
            update(jnp.where(valid, pf, -jnp.inf),   # for max / exp path
                   jnp.where(valid, pf, 0.0))        # for raw-logit sum

        @pl.when(ci != last_ci)
        def _():
            update(pf, pf)                           # fast path: zero mask work
    else:
        update(pf, pf)

    @pl.when(ci == last_ci)
    def _():                                    # finalize per-row loss
        per_row = m_sc[...] + jnp.log(l_sc[...]) - acc_sc[...]
        # zero padded rows (N % TN != 0) so the wrapper can just sum.
        row = jax.lax.broadcasted_iota(jnp.int32, (tn, 1), 0) + ri * tn
        out_ref[...] = jnp.where(row < n_rows, per_row, 0.0)


def _round_up(v, m):
    return (v + m - 1) // m * m


def _has_big_vmem():
    """True for chips with 128 MiB VMEM per TensorCore (v5e/v5p/v6e).

    Conservative for anything unrecognized (v7x has only 64 MiB per core)."""
    try:
        kind = jax.devices()[0].device_kind.lower()
    except Exception:
        return False
    return ("v5" in kind) or ("v6" in kind)


def label_smoothing_cross_entropy(x, target, *, smoothing=0.1,
                                  row_tile=256, class_tile=None):
    """x: (N, C) float (f32/bf16); target: (N,) int.  Returns scalar f32 loss."""
    n, c = x.shape
    assert 0.0 <= smoothing < 1.0

    big_vmem = _has_big_vmem()
    if class_tile is None:
        # 256 x 8192 fits a 96 MiB scoped budget on v5e/v6e (128 MiB VMEM);
        # 256 x 4096 with a 48 MiB budget is safe on v7x's 64 MiB VMEM.
        class_tile = 8192 if big_vmem else 4096
    vmem_limit = (96 if big_vmem else 48) * 1024 * 1024

    # Row tile: multiple of 16 (bf16 sublane pack).  Prefer >= 2 row tiles
    # whenever the batch allows it so v7x's two TensorCores both get work
    # through the "parallel" row axis.
    if n <= 16:
        tn = n
    elif n <= 2 * row_tile:
        tn = min(row_tile, _round_up(pl.cdiv(n, 2), 16))
    else:
        tn = row_tile
    tc = c if c <= class_tile else class_tile
    assert tn == n or tn % 16 == 0
    assert tc == c or tc % 128 == 0

    n_row_tiles = pl.cdiv(n, tn)
    n_cls_tiles = pl.cdiv(c, tc)
    col_mask_needed = (c % tc) != 0             # only the last class tile

    tgt2d = target.astype(jnp.int32).reshape(n, 1)

    kernel = functools.partial(
        _ls_ce_kernel, smoothing=float(smoothing), n_rows=n, n_classes=c,
        col_mask_needed=col_mask_needed)

    def run(logits_spec):
        grid_spec = pltpu.PrefetchScalarGridSpec(
            num_scalar_prefetch=0,
            grid=(n_row_tiles, n_cls_tiles),    # reduction (class) axis last
            in_specs=[
                logits_spec,                                    # logits tile
                pl.BlockSpec((tn, 1), lambda i, k: (i, 0)),     # target idx
            ],
            # NOTE: per-row losses stay a (TN, 1) block: the store only runs
            # once per row tile (finalize), so the masked-store cost of the
            # lane-1 layout is negligible and we avoid an in-kernel transpose.
            out_specs=pl.BlockSpec((tn, 1), lambda i, k: (i, 0)),
            scratch_shapes=[pltpu.VMEM((tn, 1), jnp.float32)] * 3,  # m, l, acc
        )
        return pl.pallas_call(
            kernel,
            out_shape=jax.ShapeDtypeStruct((n_row_tiles * tn, 1), jnp.float32),
            grid_spec=grid_spec,
            compiler_params=pltpu.CompilerParams(
                dimension_semantics=("parallel", "arbitrary"),
                vmem_limit_bytes=vmem_limit,
            ),
            cost_estimate=pl.CostEstimate(
                flops=6 * n * c,
                transcendentals=n * c,
                bytes_accessed=n * c * x.dtype.itemsize + n * 4
                + n_row_tiles * tn * 4,
            ),
        )(x, tgt2d)     # x streamed in its native dtype (bf16 stays bf16)

    # Preferred: 3-deep buffering on the streamed logits to hide DMA jitter
    # once the kernel is HBM-bound; fall back to default double-buffering if
    # this jax/Mosaic build does not support pipeline_mode.
    logits_specs = []
    if hasattr(pl, "Buffered"):
        try:
            logits_specs.append(pl.BlockSpec((tn, tc), lambda i, k: (i, k),
                                             pipeline_mode=pl.Buffered(3)))
        except TypeError:
            pass
    logits_specs.append(pl.BlockSpec((tn, tc), lambda i, k: (i, k)))

    per_row = None
    for idx, spec in enumerate(logits_specs):
        try:
            per_row = run(spec)
            break
        except Exception:
            if idx == len(logits_specs) - 1:
                raise

    # padded rows were written as exactly 0; divide by the true batch size.
    return jnp.sum(per_row) / jnp.float32(n)


def _reference(x, target, smoothing=0.1):
    xf = x.astype(jnp.float32)
    logp = jax.nn.log_softmax(xf, axis=-1)
    idx = target.reshape(-1, 1).astype(jnp.int32)
    nll = -jnp.take_along_axis(logp, idx, axis=-1)[:, 0]
    smooth = -jnp.mean(logp, axis=-1)
    return jnp.mean((1.0 - smoothing) * nll + smoothing * smooth)


if __name__ == "__main__":
    key = jax.random.PRNGKey(0)
    kp, kt, kp2, kt2 = jax.random.split(key, 4)

    # --- small f32 case (single tile, no masking anywhere) ---
    N, C = 8, 32
    pred = jax.random.normal(kp, (N, C), dtype=jnp.float32)
    target = jax.random.randint(kt, (N,), 0, C, dtype=jnp.int32)
    loss = jax.block_until_ready(
        label_smoothing_cross_entropy(pred, target, smoothing=0.1))
    ref = _reference(pred, target, smoothing=0.1)
    assert jnp.allclose(loss, ref, atol=1e-5, rtol=1e-5), (loss, ref)

    # --- bf16, forced small tiles: multiple row AND class tiles, partial
    #     tails on both axes -> exercises the masked tail branch + fast path
    #     + online-LSE accumulation across class tiles.
    N2, C2 = 260, 2200
    pred2 = jax.random.normal(kp2, (N2, C2), dtype=jnp.float32).astype(jnp.bfloat16)
    target2 = jax.random.randint(kt2, (N2,), 0, C2, dtype=jnp.int32)
    loss2 = jax.block_until_ready(
        label_smoothing_cross_entropy(pred2, target2, smoothing=0.1,
                                      row_tile=128, class_tile=1024))
    ref2 = _reference(pred2, target2, smoothing=0.1)
    assert jnp.allclose(loss2, ref2, atol=2e-4, rtol=2e-4), (loss2, ref2)

    # --- same data, default (generation-aware) tiles: full-width class tile
    #     and two row tiles (v7x two-TensorCore split path).
    loss3 = jax.block_until_ready(
        label_smoothing_cross_entropy(pred2, target2, smoothing=0.1))
    assert jnp.allclose(loss3, ref2, atol=2e-4, rtol=2e-4), (loss3, ref2)

    print("KERNEL_OK")
</pallas_src>

<mosaic_0001>
module attributes {stable_mosaic.version = 11 : i64} {
  func.func @_ls_ce_kernel(%arg0: i32, %arg1: i32, %arg2: memref<8x32xf32, #tpu.memory_space<vmem>>, %arg3: memref<8x1xi32, #tpu.memory_space<vmem>>, %arg4: memref<8x1xf32, #tpu.memory_space<vmem>>, %arg5: memref<8x1xf32, #tpu.memory_space<vmem>>, %arg6: memref<8x1xf32, #tpu.memory_space<vmem>>, %arg7: memref<8x1xf32, #tpu.memory_space<vmem>>) attributes {dimension_semantics = [#tpu.dimension_semantics<parallel>, #tpu.dimension_semantics<arbitrary>], iteration_bounds = array<i64: 1, 1>, scalar_prefetch = 0 : i64, scratch_operands = 3 : i64, tpu.core_type = #tpu.core_type<tc>, window_params = [{transform_indices = @transform_0, window_bounds = array<i64: 8, 32>}, {transform_indices = @transform_1, window_bounds = array<i64: 8, 1>}, {transform_indices = @transform_2, window_bounds = array<i64: 8, 1>}]} {
    %c0_i32 = arith.constant 0 : i32
    %0 = arith.cmpi eq, %arg1, %c0_i32 : i32
    %1 = arith.extui %0 : i1 to i32
    %c0_i32_0 = arith.constant 0 : i32
    %2 = arith.cmpi ne, %1, %c0_i32_0 : i32
    scf.if %2 {
      %cst_24 = arith.constant 0xFF800000 : f32
      %44 = vector.broadcast %cst_24 : f32 to vector<8x1xf32>
      %c0_25 = arith.constant 0 : index
      %c0_26 = arith.constant 0 : index
      %45 = vector.load %arg5[%c0_25, %c0_26] : memref<8x1xf32, #tpu.memory_space<vmem>>, vector<8x1xf32>
      tpu.vector_store %arg5[%c0_25, %c0_26], %44 {strides = array<i32>} : memref<8x1xf32, #tpu.memory_space<vmem>>, vector<8x1xf32>,
      %cst_27 = arith.constant 0.000000e+00 : f32
      %46 = vector.broadcast %cst_27 : f32 to vector<8x1xf32>
      %c0_28 = arith.constant 0 : index
      %c0_29 = arith.constant 0 : index
      %47 = vector.load %arg6[%c0_28, %c0_29] : memref<8x1xf32, #tpu.memory_space<vmem>>, vector<8x1xf32>
      tpu.vector_store %arg6[%c0_28, %c0_29], %46 {strides = array<i32>} : memref<8x1xf32, #tpu.memory_space<vmem>>, vector<8x1xf32>,
      %cst_30 = arith.constant 0.000000e+00 : f32
      %48 = vector.broadcast %cst_30 : f32 to vector<8x1xf32>
      %c0_31 = arith.constant 0 : index
      %c0_32 = arith.constant 0 : index
      %49 = vector.load %arg7[%c0_31, %c0_32] : memref<8x1xf32, #tpu.memory_space<vmem>>, vector<8x1xf32>
      tpu.vector_store %arg7[%c0_31, %c0_32], %48 {strides = array<i32>} : memref<8x1xf32, #tpu.memory_space<vmem>>, vector<8x1xf32>,
    } else {
    }
    %c0 = arith.constant 0 : index
    %c0_1 = arith.constant 0 : index
    %3 = vector.load %arg2[%c0, %c0_1] : memref<8x32xf32, #tpu.memory_space<vmem>>, vector<8x32xf32>
    %4 = tpu.iota {dimensions = array<i32: 1>} : vector<8x32xi32>
    %c0_2 = arith.constant 0 : index
    %c0_3 = arith.constant 0 : index
    %5 = vector.load %arg3[%c0_2, %c0_3] : memref<8x1xi32, #tpu.memory_space<vmem>>, vector<8x1xi32>
    %c32_i32 = arith.constant 32 : i32
    %6 = arith.muli %arg1, %c32_i32 : i32
    %7 = vector.broadcast %6 : i32 to vector<8x1xi32>
    %8 = arith.subi %5, %7 : vector<8x1xi32>
    %9 = vector.broadcast %8 : vector<8x1xi32> to vector<8x32xi32>
    %10 = arith.cmpi eq, %4, %9 : vector<8x32xi32>
    %cst = arith.constant 0.000000e+00 : f32
    %11 = vector.broadcast %cst : f32 to vector<8x32xf32>
    %12 = arith.select %10, %3, %11 : vector<8x32xi1>, vector<8x32xf32>
    %cst_4 = arith.constant dense<0.000000e+00> : vector<8xf32>
    %13 = vector.multi_reduction <add>, %12, %cst_4 [1] : vector<8x32xf32> to vector<8xf32>
    %14 = vector.shape_cast %13 : vector<8xf32> to vector<8x1xf32>
    %c0_5 = arith.constant 0 : index
    %c0_6 = arith.constant 0 : index
    %15 = vector.load %arg5[%c0_5, %c0_6] : memref<8x1xf32, #tpu.memory_space<vmem>>, vector<8x1xf32>
    %cst_7 = arith.constant dense<0xFF800000> : vector<8xf32>
    %16 = vector.multi_reduction <maximumf>, %3, %cst_7 [1] : vector<8x32xf32> to vector<8xf32>
    %17 = vector.shape_cast %16 : vector<8xf32> to vector<8x1xf32>
    %18 = arith.maximumf %15, %17 : vector<8x1xf32>
    %c0_8 = arith.constant 0 : index
    %c0_9 = arith.constant 0 : index
    %19 = vector.load %arg6[%c0_8, %c0_9] : memref<8x1xf32, #tpu.memory_space<vmem>>, vector<8x1xf32>
    %20 = arith.subf %15, %18 : vector<8x1xf32>
    %21 = math.exp %20 : vector<8x1xf32>
    %22 = arith.mulf %19, %21 : vector<8x1xf32>
    %23 = vector.broadcast %18 : vector<8x1xf32> to vector<8x32xf32>
    %24 = arith.subf %3, %23 : vector<8x32xf32>
    %25 = math.exp %24 : vector<8x32xf32>
    %cst_10 = arith.constant dense<0.000000e+00> : vector<8xf32>
    %26 = vector.multi_reduction <add>, %25, %cst_10 [1] : vector<8x32xf32> to vector<8xf32>
    %27 = vector.shape_cast %26 : vector<8xf32> to vector<8x1xf32>
    %28 = arith.addf %22, %27 : vector<8x1xf32>
    %c0_11 = arith.constant 0 : index
    %c0_12 = arith.constant 0 : index
    %29 = vector.load %arg6[%c0_11, %c0_12] : memref<8x1xf32, #tpu.memory_space<vmem>>, vector<8x1xf32>
    tpu.vector_store %arg6[%c0_11, %c0_12], %28 {strides = array<i32>} : memref<8x1xf32, #tpu.memory_space<vmem>>, vector<8x1xf32>,
    %c0_13 = arith.constant 0 : index
    %c0_14 = arith.constant 0 : index
    %30 = vector.load %arg5[%c0_13, %c0_14] : memref<8x1xf32, #tpu.memory_space<vmem>>, vector<8x1xf32>
    tpu.vector_store %arg5[%c0_13, %c0_14], %18 {strides = array<i32>} : memref<8x1xf32, #tpu.memory_space<vmem>>, vector<8x1xf32>,
    %c0_15 = arith.constant 0 : index
    %c0_16 = arith.constant 0 : index
    %31 = vector.load %arg7[%c0_15, %c0_16] : memref<8x1xf32, #tpu.memory_space<vmem>>, vector<8x1xf32>
    %cst_17 = arith.constant 0.899999976 : f32
    %32 = vector.broadcast %cst_17 : f32 to vector<8x1xf32>
    %33 = arith.mulf %32, %14 : vector<8x1xf32>
    %cst_18 = arith.constant dense<0.000000e+00> : vector<8xf32>
    %34 = vector.multi_reduction <add>, %3, %cst_18 [1] : vector<8x32xf32> to vector<8xf32>
    %35 = vector.shape_cast %34 : vector<8xf32> to vector<8x1xf32>
    %cst_19 = arith.constant 3.125000e-03 : f32
    %36 = vector.broadcast %cst_19 : f32 to vector<8x1xf32>
    %37 = arith.mulf %36, %35 : vector<8x1xf32>
    %38 = arith.addf %33, %37 : vector<8x1xf32>
    %39 = arith.addf %31, %38 : vector<8x1xf32>
    %c0_20 = arith.constant 0 : index
    %c0_21 = arith.constant 0 : index
    %40 = vector.load %arg7[%c0_20, %c0_21] : memref<8x1xf32, #tpu.memory_space<vmem>>, vector<8x1xf32>
    tpu.vector_store %arg7[%c0_20, %c0_21], %39 {strides = array<i32>} : memref<8x1xf32, #tpu.memory_space<vmem>>, vector<8x1xf32>,
    %c0_i32_22 = arith.constant 0 : i32
    %41 = arith.cmpi eq, %arg1, %c0_i32_22 : i32
    %42 = arith.extui %41 : i1 to i32
    %c0_i32_23 = arith.constant 0 : i32
    %43 = arith.cmpi ne, %42, %c0_i32_23 : i32
    scf.if %43 {
      %c0_24 = arith.constant 0 : index
      %c0_25 = arith.constant 0 : index
      %44 = vector.load %arg5[%c0_24, %c0_25] : memref<8x1xf32, #tpu.memory_space<vmem>>, vector<8x1xf32>
      %c0_26 = arith.constant 0 : index
      %c0_27 = arith.constant 0 : index
      %45 = vector.load %arg6[%c0_26, %c0_27] : memref<8x1xf32, #tpu.memory_space<vmem>>, vector<8x1xf32>
      %46 = math.log %45 : vector<8x1xf32>
      %47 = arith.addf %44, %46 : vector<8x1xf32>
      %c0_28 = arith.constant 0 : index
      %c0_29 = arith.constant 0 : index
      %48 = vector.load %arg7[%c0_28, %c0_29] : memref<8x1xf32, #tpu.memory_space<vmem>>, vector<8x1xf32>
      %49 = arith.subf %47, %48 : vector<8x1xf32>
      %50 = tpu.iota {dimensions = array<i32: 0>} : vector<8x1xi32>
      %c8_i32 = arith.constant 8 : i32
      %51 = arith.muli %arg0, %c8_i32 : i32
      %52 = vector.broadcast %51 : i32 to vector<8x1xi32>
      %53 = arith.addi %50, %52 : vector<8x1xi32>
      %c8_i32_30 = arith.constant 8 : i32
      %54 = vector.broadcast %c8_i32_30 : i32 to vector<8x1xi32>
      %55 = arith.cmpi slt, %53, %54 : vector<8x1xi32>
      %cst_31 = arith.constant 0.000000e+00 : f32
      %56 = vector.broadcast %cst_31 : f32 to vector<8x1xf32>
      %57 = arith.select %55, %49, %56 : vector<8x1xi1>, vector<8x1xf32>
      %c0_32 = arith.constant 0 : index
      %c0_33 = arith.constant 0 : index
      %58 = vector.load %arg4[%c0_32, %c0_33] : memref<8x1xf32, #tpu.memory_space<vmem>>, vector<8x1xf32>
      tpu.vector_store %arg4[%c0_32, %c0_33], %57 {strides = array<i32>} : memref<8x1xf32, #tpu.memory_space<vmem>>, vector<8x1xf32>,
    } else {
    }
    return
  }
  func.func @transform_0(%arg0: i32, %arg1: i32) -> (i32, i32) {
    %c0_i32 = arith.constant 0 : i32
    return %arg0, %arg1 : i32, i32
  }
  func.func @transform_1(%arg0: i32, %arg1: i32) -> (i32, i32) {
    %c0_i32 = arith.constant 0 : i32
    %c0_i32_0 = arith.constant 0 : i32
    return %arg0, %c0_i32 : i32, i32
  }
  func.func @transform_2(%arg0: i32, %arg1: i32) -> (i32, i32) {
    %c0_i32 = arith.constant 0 : i32
    %c0_i32_0 = arith.constant 0 : i32
    return %arg0, %c0_i32 : i32, i32
  }
}

</mosaic_0001>

<bundles_post_ra>
// kernel: tpu_custom_call.1
= control target key start
LH: loop header
LB: loop body
LE: loop exit
PB: predicated region body
PF: predicated region fallthrough
CT: control target
= control target key end

     0   :  { %vm31_vm0 = vcmask 261120   ;;  %vm15_vm1 = vcmask 7168   ;;  %v102_v1 = vmov -inf   ;;  %v103_v3 = vmov 0   ;;  %s140_s0 = inlined_call_operand.vmem [shape: f32[8,32], index: 0, kind: input, shape index: {}]   ;;  %s141_s1 = inlined_call_operand.vmem [shape: s32[8,1], index: 1, kind: input, shape index: {}]   ;;  %s142_s2 = inlined_call_operand.vmem [shape: f32[8,1], index: 2, kind: output, shape index: {}]  }
   0x1   :  { %v19_v0 = vld [vmem:[%s140_s0] sm:$0xff]  ;;  %16 = vst.msk [vmem:[#allocation2] sm:$0xff] %vm15_vm1, %v102_v1  ;;  %95 = vset.pattern.permute.xlu1 %v103_v3  ;;  %94 = vset.pattern.permute.xlu0 %v103_v3  ;;  %v104_v5 = vmov 0.0   ;;  %v20_v10 = vlaneseq }
   0x2   :  { %v36_v2 = vsel %vm31_vm0, %v19_v0, -inf  ;;  %v22_v4 = vld [vmem:[%s141_s1] sm:$0xff]  ;;  %18 = vst.msk [vmem:[#allocation4] sm:$0xff] %vm15_vm1, %v104_v5  ;;  %v62_v15 = vsel %vm31_vm0, %v19_v0, 0.0 }
   0x3   :  { %37 = vmax.xlane.f32.xlu0 %v36_v2  ;;  %27 = vperm.xlu1 %95, %v22_v4   ;;  %17 = vst.msk [vmem:[#allocation3] sm:$0xff] %vm15_vm1, %v104_v5  ;;  %v21_v11 = vand.u32 127, %v20_v10 }
   0x8   :  { %v35_v6 = vld [vmem:[#allocation2] sm:$0xff] }
   0x9   :  { %v60_v25 = vld [vmem:[#allocation4] sm:$0xff] }
   0xa   :  { %v40_v30 = vld [vmem:[#allocation3] sm:$0xff] }
  0x75   :  { %v28_v12 = vpop.permute.xlu1 %27 }
  0x76   :  { %v38_v7 = vpop.xlane.xlu0 %37  ;;  %vm29_vm2 = vcmp.eq.s32.totalorder %v21_v11, %v28_v12 }
  0x77   :  { %v39_v8 = vmax.f32 %v35_v6, %v38_v7  ;;  %v30_v13 = vsel %vm29_vm2, %v19_v0, 0.0 }
  0x78   :  { %v32_v14 = vsel %vm31_vm0, %v30_v13, 0.0 }
  0x79   :  { %v41_v9 = vsub.f32 %v35_v6, %v39_v8  ;;  %59 = vst.msk [vmem:[#allocation2] sm:$0xff] %vm15_vm1, %v39_v8  ;;  %47 = vperm.xlu0 %94, %v39_v8   ;;  %33 = vadd.xlane.f32.xlu2 %v32_v14 }
  0x7b   :  { %v42_v28 = vmul.f32 1.442695, %v41_v9 }
  0x80   :  { %v72_v37 = vld [vmem:[#allocation2] sm:$0xff] }
  0x81   :  { %63 = vadd.xlane.f32.xlu2 %v62_v15 }
  0xeb   :  { %v48_v16 = vpop.permute.xlu0 %47 }
  0xec   :  { %v50_v17 = vsub.f32 %v19_v0, %v48_v16  ;;  %v34_v21 = vpop.xlane.xlu2 %33 }
  0xed   :  { %v61_v22 = vmul.f32 0.9, %v34_v21 }
  0xee   :  { %v51_v18 = vmul.f32 1.442695, %v50_v17 }
  0xf0   :  { %96 = vpow2.f32 %v51_v18 }
  0xf1   :  { %98 = vpow2.f32 %v42_v28 }
  0xf4   :  { %v64_v23 = vpop.xlane.xlu2 %63 }
  0xf5   :  { %v65_v24 = vmul.f32 0.003125, %v64_v23 }
  0xf6   :  { %v97_v19 = vpop.eup %96 }
  0xf7   :  { %v53_v20 = vsel %vm31_vm0, %v97_v19, 0.0  ;;  %v66_v26 = vadd.f32 %v65_v24, %v61_v22  ;;  %v99_v29 = vpop.eup %98 }
  0xf8   :  { %54 = vadd.xlane.f32.xlu1 %v53_v20  ;;  %v44_v31 = vmul.f32 %v99_v29, %v40_v30 }
  0xf9   :  { %v67_v27 = vadd.f32 %v66_v26, %v60_v25 }
  0xfb   :  { %68 = vst.msk [vmem:[#allocation4] sm:$0xff] %vm15_vm1, %v67_v27 }
 0x102   :  { %v77_v39 = vld [vmem:[#allocation4] sm:$0xff] }
 0x16b   :  { %v55_v32 = vpop.xlane.xlu1 %54 }
 0x16c   :  { %v56_v33 = vadd.f32 %v55_v32, %v44_v31 }
 0x16e   :  { %58 = vst.msk [vmem:[#allocation3] sm:$0xff] %vm15_vm1, %v56_v33 }
 0x175   :  { %v73_v34 = vld [vmem:[#allocation3] sm:$0xff] }
 0x176   :  { %100 = vlog2.f32 %v73_v34 }
 0x17c   :  { %v101_v35 = vpop.eup %100 }
 0x17d   :  { %v75_v36 = vmul.f32 0.6931472, %v101_v35 }
 0x17f   :  { %v76_v38 = vadd.f32 %v75_v36, %v72_v37 }
 0x181   :  { %v78_v40 = vsub.f32 %v76_v38, %v77_v39 }
 0x183   :  { %86 = vst.msk [vmem:[%s142_s2] sm:$0xff] %vm15_vm1, %v78_v40 }

</bundles_post_ra>
